<compile_context>
chip_gen: v5e
topology: v5e:2x2
jax: 0.10.0
libtpu: 0.0.40
codegen_flags: <defaults>
</compile_context>

<pallas_src>
import functools

import jax
import jax.numpy as jnp
from jax.experimental import pallas as pl
from jax.experimental.pallas import tpu as pltpu

LANES = 128      # TPU lane width; every layer width here is <= 128
BIAS_ROWS = 16   # full bf16 packed-sublane tile for the bias slab


def _round_up(x, m):
    return (x + m - 1) // m * m


def mlp_kernel(x_ref, p_ref, o_ref, *, r1, hp):
    """Fused 3-layer MLP on one packed, VMEM-resident parameter buffer.

    Packed layout (rows, 128), bf16:
      rows [0        , r1          ) : W1  (r1  x 128)   (r1 = 16-aligned input dim)
      rows [r1       , r1+hp       ) : W2  (128 x 128)
      rows [r1+hp    , r1+2*hp     ) : W3  (128 x 128)
      rows [r1+2*hp  , +BIAS_ROWS  ) : biases b1, b2, b3 + zero padding
    """
    o2 = r1
    o3 = o2 + hp
    ob = o3 + hp

    w1 = p_ref[0:o2, :]
    w2 = p_ref[o2:o3, :]
    w3 = p_ref[o3:ob, :]
    # One clean 16-row bf16 packed-sublane load, then slice as an array.
    bias = p_ref[ob:ob + BIAS_ROWS, :].astype(jnp.float32)
    b1 = bias[0:1, :]
    b2 = bias[1:2, :]
    b3 = bias[2:3, :]

    # x arrives as f32 straight from HBM; the bf16 cast runs on the VPU and is
    # hidden under the DMA (no separate wrapper-side cast pass over HBM).
    x = x_ref[...].astype(jnp.bfloat16)                          # (tb, r1)

    # Bias-add / ReLU stay in f32 (v5e-safe); bf16 only as MXU operands.
    h = jnp.dot(x, w1, preferred_element_type=jnp.float32)       # f32 acc
    h = jnp.maximum(h + b1, 0.0).astype(jnp.bfloat16)
    h = jnp.dot(h, w2, preferred_element_type=jnp.float32)
    h = jnp.maximum(h + b2, 0.0).astype(jnp.bfloat16)
    out = jnp.dot(h, w3, preferred_element_type=jnp.float32) + b3
    o_ref[...] = out.astype(o_ref.dtype)   # bf16, lane-dense (unmasked) 128-wide store


def pack_params(w1, b1, w2, b2, w3, b3, *, dtype=jnp.bfloat16):
    """Pack all parameters into one lane-padded, sublane-concatenated buffer.

    Returns (packed, r1). `r1` is the 16-row-aligned input width and MUST be
    threaded to neural_net_forward (do not re-derive it from array shapes).
    """
    d_in = w1.shape[0]
    r1 = _round_up(d_in, 16)   # 16-row alignment -> clean bf16 sublane slices
    hp = LANES

    def pad_w(w, rows):
        r, c = w.shape
        return jnp.pad(w, ((0, rows - r), (0, hp - c)))

    def pad_b(b):
        b = jnp.asarray(b).reshape(1, -1)
        return jnp.pad(b, ((0, 0), (0, hp - b.shape[1])))

    w1p = pad_w(w1, r1)     # (r1, 128)
    w2p = pad_w(w2, hp)     # (128, 128), zero rows for padded hidden lanes
    w3p = pad_w(w3, hp)     # (128, 128)
    bias = jnp.concatenate(
        [pad_b(b1), pad_b(b2), pad_b(b3), jnp.zeros((BIAS_ROWS - 3, hp), w1.dtype)],
        axis=0,
    )                       # (16, 128): full bf16 packed-sublane tile
    packed = jnp.concatenate([w1p, w2p, w3p, bias], axis=0)
    return packed.astype(dtype), r1


def _pick_batch_tile(batch):
    """Batch tile: big enough to amortize the ~0.35 us per-grid-step overhead,
    small enough to leave >=2 grid programs so v7x's two TensorCores both get
    work. Capped at 1024; aligned to 256 rows for the v6e/v7x MXU M dim."""
    if batch <= 16:
        return batch                       # single tiny tile; nothing to split
    tb = min(1024, _round_up(pl.cdiv(batch, 2), 8))
    if tb >= 256:
        tb = (tb // 256) * 256
    return tb


@functools.partial(jax.jit, static_argnames=("r1",))
def neural_net_forward(x, packed, *, r1):
    """Returns the lane-padded (batch, 128) bf16 output slab.

    Lanes [true_out_features:] are exactly zero (zero-padded W3/b3 columns);
    slice them in the consumer (ideally fused there) so the kernel's output
    stream stays a single lane-dense bf16 pass over HBM.
    """
    batch, d_in = x.shape
    rows, hp = packed.shape

    # Lane-pad the input only when its width isn't already 16-aligned
    # (no-op in the common case; the bf16 cast itself is done in the kernel).
    if d_in != r1:
        x = jnp.pad(x, ((0, 0), (0, r1 - d_in)))

    tb = _pick_batch_tile(batch)
    grid = pl.cdiv(batch, tb)
    padded_batch = grid * tb
    if padded_batch != batch:   # cdiv grid keeps VMEM bounded; pad tail rows only
        x = jnp.pad(x, ((0, padded_batch - batch), (0, 0)))

    kernel = functools.partial(mlp_kernel, r1=r1, hp=hp)

    flops = 2 * padded_batch * (r1 * hp + hp * hp + hp * hp)
    bytes_accessed = (
        padded_batch * r1 * 4          # f32 activation read
        + rows * hp * 2                # bf16 packed params (read once, resident)
        + padded_batch * hp * 2        # bf16 lane-dense output write
    )

    out = pl.pallas_call(
        kernel,
        out_shape=jax.ShapeDtypeStruct((padded_batch, hp), jnp.bfloat16),
        grid=(grid,),
        in_specs=[
            pl.BlockSpec((tb, r1), lambda i: (i, 0)),     # batch tile of x (f32)
            # Constant index_map -> the packed weight slab stays VMEM-resident
            # across all batch tiles (one HBM->VMEM DMA total).
            # NOTE: pipeline_mode=pl.Buffered(1) would shave another ~74 KiB of
            # VMEM for this constant operand; left at the default for maximal
            # lowering portability across jax versions.
            pl.BlockSpec((rows, hp), lambda i: (0, 0)),
        ],
        out_specs=pl.BlockSpec((tb, hp), lambda i: (i, 0)),
        compiler_params=pltpu.CompilerParams(
            dimension_semantics=("parallel",),
            vmem_limit_bytes=32 * 1024 * 1024,
        ),
        cost_estimate=pl.CostEstimate(
            flops=flops, transcendentals=0, bytes_accessed=bytes_accessed
        ),
    )(x, packed)

    if padded_batch != batch:
        out = out[:batch]
    return out


def init_linear(key, in_features, out_features, dtype=jnp.float32):
    # Mimic PyTorch nn.Linear default init: U(-1/sqrt(fan_in), 1/sqrt(fan_in)).
    # Weights stored as [in, out] (transposed from PyTorch) so we compute x @ W + b.
    kw, kb = jax.random.split(key)
    bound = 1.0 / (in_features ** 0.5)
    w = jax.random.uniform(kw, (in_features, out_features), dtype, -bound, bound)
    b = jax.random.uniform(kb, (1, out_features), dtype, -bound, bound)
    return w, b


def reference_forward(x, w1, b1, w2, b2, w3, b3):
    # Plain-JAX reference mirroring the kernel's bf16 operand quantization
    # (f32 accumulation), so the comparison isolates kernel correctness.
    bf, f32 = jnp.bfloat16, jnp.float32
    hi = jax.lax.Precision.HIGHEST
    q = lambda a: a.astype(bf).astype(f32)
    h = jnp.dot(q(x), q(w1), precision=hi) + q(b1)
    h = q(jnp.maximum(h, 0.0))
    h = jnp.dot(h, q(w2), precision=hi) + q(b2)
    h = q(jnp.maximum(h, 0.0))
    return jnp.dot(h, q(w3), precision=hi) + q(b3)


if __name__ == "__main__":
    # Module hyper-parameters (small, consistent with the forward pass).
    input_size = 32
    hidden_size00 = 64
    hidden_size01 = 32
    hidden_size02 = 16
    num_classes = 10          # l4 exists in __init__ but is never used in forward
    batch = 8

    key = jax.random.PRNGKey(0)
    kx, k1, k2, k3, k4 = jax.random.split(key, 5)

    x = jax.random.normal(kx, (batch, input_size), jnp.float32)
    w1, b1 = init_linear(k1, input_size, hidden_size00)
    w2, b2 = init_linear(k2, hidden_size00, hidden_size01)
    w3, b3 = init_linear(k3, hidden_size01, hidden_size02)
    w4, b4 = init_linear(k4, hidden_size02, num_classes)  # unused (parity with __init__)
    # TODO(synk): l4 is dead code in the reference forward(); not lowered.

    packed, r1 = pack_params(w1, b1, w2, b2, w3, b3)       # one-time offline packing

    out_slab = neural_net_forward(x, packed, r1=r1)        # (batch, 128) bf16 slab
    jax.block_until_ready(out_slab)

    ref = reference_forward(x, w1, b1, w2, b2, w3, b3)
    out = out_slab[:, :hidden_size02].astype(jnp.float32)  # consumer-side slice

    assert out_slab.shape == (batch, LANES) and out_slab.dtype == jnp.bfloat16
    assert bool(jnp.all(out_slab[:, hidden_size02:] == 0))   # padded lanes exact zero
    assert jnp.allclose(out, ref, atol=1e-2, rtol=1e-2), (
        float(jnp.max(jnp.abs(out - ref)))
    )

    print("KERNEL_OK")
</pallas_src>

<mosaic_0001>
module attributes {stable_mosaic.version = 11 : i64} {
  func.func @mlp_kernel(%arg0: i32, %arg1: memref<8x32xf32, #tpu.memory_space<vmem>>, %arg2: memref<304x128xbf16, #tpu.memory_space<vmem>>, %arg3: memref<8x128xbf16, #tpu.memory_space<vmem>>) attributes {dimension_semantics = [#tpu.dimension_semantics<parallel>], iteration_bounds = array<i64: 1>, scalar_prefetch = 0 : i64, scratch_operands = 0 : i64, tpu.core_type = #tpu.core_type<tc>, window_params = [{transform_indices = @transform_0, window_bounds = array<i64: 8, 32>}, {pipeline_mode = #tpu.pipeline_mode<synchronous>, transform_indices = @transform_1, window_bounds = array<i64: 304, 128>}, {transform_indices = @transform_2, window_bounds = array<i64: 8, 128>}]} {
    %c0 = arith.constant 0 : index
    %c0_0 = arith.constant 0 : index
    %0 = vector.load %arg2[%c0, %c0_0] : memref<304x128xbf16, #tpu.memory_space<vmem>>, vector<32x128xbf16>
    %c32 = arith.constant 32 : index
    %c0_1 = arith.constant 0 : index
    %1 = vector.load %arg2[%c32, %c0_1] : memref<304x128xbf16, #tpu.memory_space<vmem>>, vector<128x128xbf16>
    %c160 = arith.constant 160 : index
    %c0_2 = arith.constant 0 : index
    %2 = vector.load %arg2[%c160, %c0_2] : memref<304x128xbf16, #tpu.memory_space<vmem>>, vector<128x128xbf16>
    %c288 = arith.constant 288 : index
    %c0_3 = arith.constant 0 : index
    %3 = vector.load %arg2[%c288, %c0_3] : memref<304x128xbf16, #tpu.memory_space<vmem>>, vector<16x128xbf16>
    %4 = arith.extf %3 : vector<16x128xbf16> to vector<16x128xf32>
    %5 = vector.extract_strided_slice %4 {offsets = [0, 0], sizes = [1, 128], strides = [1, 1]} : vector<16x128xf32> to vector<1x128xf32>
    %6 = vector.extract_strided_slice %4 {offsets = [1, 0], sizes = [1, 128], strides = [1, 1]} : vector<16x128xf32> to vector<1x128xf32>
    %7 = vector.extract_strided_slice %4 {offsets = [2, 0], sizes = [1, 128], strides = [1, 1]} : vector<16x128xf32> to vector<1x128xf32>
    %c0_4 = arith.constant 0 : index
    %c0_5 = arith.constant 0 : index
    %8 = vector.load %arg1[%c0_4, %c0_5] : memref<8x32xf32, #tpu.memory_space<vmem>>, vector<8x32xf32>
    %9 = arith.truncf %8 : vector<8x32xf32> to vector<8x32xbf16>
    %cst = arith.constant dense<0.000000e+00> : vector<8x128xf32>
    %10 = tpu.matmul %9, %0, %cst {dimension_numbers = #tpu.dot_dimension_numbers<[1], [0], [0], [1], [0, 0, 1, 1], [], []>} : vector<8x32xbf16>, vector<32x128xbf16>, vector<8x128xf32> -> vector<8x128xf32>
    %11 = vector.broadcast %5 : vector<1x128xf32> to vector<8x128xf32>
    %12 = arith.addf %10, %11 : vector<8x128xf32>
    %cst_6 = arith.constant 0.000000e+00 : f32
    %13 = vector.broadcast %cst_6 : f32 to vector<8x128xf32>
    %14 = arith.maximumf %12, %13 : vector<8x128xf32>
    %15 = arith.truncf %14 : vector<8x128xf32> to vector<8x128xbf16>
    %cst_7 = arith.constant dense<0.000000e+00> : vector<8x128xf32>
    %16 = tpu.matmul %15, %1, %cst_7 {dimension_numbers = #tpu.dot_dimension_numbers<[1], [0], [0], [1], [0, 0, 1, 1], [], []>} : vector<8x128xbf16>, vector<128x128xbf16>, vector<8x128xf32> -> vector<8x128xf32>
    %17 = vector.broadcast %6 : vector<1x128xf32> to vector<8x128xf32>
    %18 = arith.addf %16, %17 : vector<8x128xf32>
    %cst_8 = arith.constant 0.000000e+00 : f32
    %19 = vector.broadcast %cst_8 : f32 to vector<8x128xf32>
    %20 = arith.maximumf %18, %19 : vector<8x128xf32>
    %21 = arith.truncf %20 : vector<8x128xf32> to vector<8x128xbf16>
    %cst_9 = arith.constant dense<0.000000e+00> : vector<8x128xf32>
    %22 = tpu.matmul %21, %2, %cst_9 {dimension_numbers = #tpu.dot_dimension_numbers<[1], [0], [0], [1], [0, 0, 1, 1], [], []>} : vector<8x128xbf16>, vector<128x128xbf16>, vector<8x128xf32> -> vector<8x128xf32>
    %23 = vector.broadcast %7 : vector<1x128xf32> to vector<8x128xf32>
    %24 = arith.addf %22, %23 : vector<8x128xf32>
    %25 = arith.truncf %24 : vector<8x128xf32> to vector<8x128xbf16>
    %c0_10 = arith.constant 0 : index
    %c0_11 = arith.constant 0 : index
    %26 = vector.load %arg3[%c0_10, %c0_11] : memref<8x128xbf16, #tpu.memory_space<vmem>>, vector<8x128xbf16>
    tpu.vector_store %arg3[%c0_10, %c0_11], %25 {strides = array<i32>} : memref<8x128xbf16, #tpu.memory_space<vmem>>, vector<8x128xbf16>,
    return
  }
  func.func @transform_0(%arg0: i32) -> (i32, i32) {
    %c0_i32 = arith.constant 0 : i32
    %c0_i32_0 = arith.constant 0 : i32
    return %arg0, %c0_i32 : i32, i32
  }
  func.func @transform_1(%arg0: i32) -> (i32, i32) {
    %c0_i32 = arith.constant 0 : i32
    %c0_i32_0 = arith.constant 0 : i32
    %c0_i32_1 = arith.constant 0 : i32
    return %c0_i32, %c0_i32_0 : i32, i32
  }
  func.func @transform_2(%arg0: i32) -> (i32, i32) {
    %c0_i32 = arith.constant 0 : i32
    %c0_i32_0 = arith.constant 0 : i32
    return %arg0, %c0_i32 : i32, i32
  }
}

</mosaic_0001>

<bundles_post_ra>
// kernel: neural_net_forward.1
= control target key start
LH: loop header
LB: loop body
LE: loop exit
PB: predicated region body
PF: predicated region fallthrough
CT: control target
= control target key end

     0   :  { %7 = vsyncpa [#allocation3], 0  ;;  %s464_s0 = inlined_call_operand.hbm [shape: f32[8,32], index: 0, kind: input, shape index: {}]   ;;  %s465_s1 = inlined_call_operand.hbm [shape: bf16[304,128], index: 1, kind: input, shape index: {}]   ;;  %s466_s2 = inlined_call_operand.hbm [shape: bf16[8,128], index: 2, kind: output, shape index: {}]  }
   0x1   :  { %8 = vsyncpa [#allocation6], 0 }
   0x2   :  { %9 = vsyncpa [#allocation4], 0  ;;  %s15_s11 = sshll.u32 %s464_s0, 4  ;;  %s435_s12 = smov [#allocation2]   ;;  %s16_s11 = int_to_ptr.hbm [resolvable:$true] %s15_s11 }
   0x3   :  { %s17_s13 = sshll.u32 %s435_s12, 4  ;;  %s25_s16 = sshll.u32 %s465_s1, 4  ;;  %s18_s13 = int_to_ptr.vmem [resolvable:$true] %s17_s13  ;;  %s26_s16 = int_to_ptr.hbm [resolvable:$true] %s25_s16 }
   0x4   :  { %20 = dma.hbm_to_vmem [thread:$0]  %s16_s11, 128, %s18_s13, [#allocation3]  }
   0x5   :  { %s436_s17 = smov [#allocation5]   ;;  %s437_s19 = smov 64  }
   0x6   :  { %s27_s18 = sshll.u32 %s436_s17, 4  ;;  %s438_s20 = smov 4   ;;  %s28_s18 = int_to_ptr.vmem [resolvable:$true] %s27_s18 }
   0x7   :  { %33 = dma.hbm_to_vmem [thread:$0]  %s26_s16, 2432, %s28_s18, [#allocation6], %s437_s19, %s437_s19, %s438_s20  }
   0x8   :  { %429 = dma.done.wait [#allocation3], 128  }
   0x9   :  { %430 = vsyncadd [#allocation3], 4294967168 }
   0xa   :  { %431 = dma.done.wait [#allocation6], 2432  }
   0xb   :  { %432 = vsyncadd [#allocation6], 4294964864  ;;  %v335_v0 = vld [vmem:[#allocation5 + $0x8] sm:$0xff]  ;;  %v334_v2 = vld [vmem:[#allocation5] sm:$0xff]  ;;  %vm96_vm0 = vcmask 261120   ;;  %s439_s0 = smov [#allocation7]  }
   0xc   :  { %v343_v1 = vld [vmem:[#allocation5 + $0x48] sm:$0xff]  ;;  %106 = vmatpush.bf16.msra.mxu0 %v335_v0  ;;  %v81_v3 = vld [vmem:[#allocation2] sm:$0xff]  ;;  %v342_v4 = vld [vmem:[#allocation5 + $0x40] sm:$0xff]  ;;  %s248_s1 = sshll.u32 %s439_s0, 4  ;;  %s250_s23 = sshll.u32 %s466_s2, 4  ;;  %s249_s1 = int_to_ptr.vmem [resolvable:$true] %s248_s1  ;;  %s251_s23 = int_to_ptr.hbm [resolvable:$true] %s250_s23 }
   0xd   :  { %164 = vmatpush.bf16.msra.mxu1 %v343_v1  ;;  %v82_v5 = vpack.c.bf16 %v81_v3, %v81_v3  ;;  %v341_v6 = vld [vmem:[#allocation5 + $0x38] sm:$0xff]  ;;  %v340_v7 = vld [vmem:[#allocation5 + $0x30] sm:$0xff]  ;;  %v339_v8 = vld [vmem:[#allocation5 + $0x28] sm:$0xff] }
   0xe   :  { %v338_v9 = vld [vmem:[#allocation5 + $0x20] sm:$0xff]  ;;  %v337_v10 = vld [vmem:[#allocation5 + $0x18] sm:$0xff]  ;;  %v336_v11 = vld [vmem:[#allocation5 + $0x10] sm:$0xff] }
   0xf   :  { %v351_v12 = vld [vmem:[#allocation5 + $0x88] sm:$0xff]  ;;  %v350_v13 = vld [vmem:[#allocation5 + $0x80] sm:$0xff]  ;;  %v349_v14 = vld [vmem:[#allocation5 + $0x78] sm:$0xff] }
  0x10   :  { %107 = vmatpush.bf16.msra.mxu0 %v334_v2  ;;  %228 = vmatpush.bf16.msra.mxu2 %v351_v12  ;;  %v348_v15 = vld [vmem:[#allocation5 + $0x70] sm:$0xff]  ;;  %v347_v17 = vld [vmem:[#allocation5 + $0x68] sm:$0xff]  ;;  %v346_v19 = vld [vmem:[#allocation5 + $0x60] sm:$0xff] }
  0x11   :  { %165 = vmatpush.bf16.msra.mxu1 %v342_v4  ;;  %v79_v16 = vld [vmem:[#allocation5 + $0x90] sm:$0xf]  ;;  %v345_v26 = vld [vmem:[#allocation5 + $0x58] sm:$0xff] }
  0x12   :  { %v80_v18 = vunpack.c.l.bf16 %v79_v16  ;;  %v344_v27 = vld [vmem:[#allocation5 + $0x50] sm:$0xff] }
  0x13   :  { %269 = vmatmul.msk.bf16.vlgmr.msra.gmra.mxu0 %vm96_vm0, %v82_v5 }
  0x14   :  { %229 = vmatpush.bf16.msra.mxu2 %v350_v13  ;;  %v83_v20 = vperm.slane %v80_v18, 0  ;;  %v115_v28 = vperm.slane %v80_v18, 1  ;;  %v179_v34 = vperm.slane %v80_v18, 2 }
  0x15   :  { %166 = vmatpush.bf16.msra.mxu1 %v341_v6 }
  0x18   :  { %230 = vmatpush.bf16.msra.mxu2 %v349_v14 }
  0x19   :  { %167 = vmatpush.bf16.msra.mxu1 %v340_v7 }
  0x1c   :  { %231 = vmatpush.bf16.msra.mxu2 %v348_v15 }
  0x1d   :  { %168 = vmatpush.bf16.msra.mxu1 %v339_v8 }
  0x20   :  { %232 = vmatpush.bf16.msra.mxu2 %v347_v17 }
  0x21   :  { %169 = vmatpush.bf16.msra.mxu1 %v338_v9 }
  0x24   :  { %233 = vmatpush.bf16.msra.mxu2 %v346_v19 }
  0x25   :  { %170 = vmatpush.bf16.msra.mxu1 %v337_v10 }
  0x28   :  { %234 = vmatpush.bf16.msra.mxu2 %v345_v26 }
  0x29   :  { %171 = vmatpush.bf16.msra.mxu1 %v336_v11 }
  0x2c   :  { %235 = vmatpush.bf16.msra.mxu2 %v344_v27 }
  0x90   :  { %v109_v21 = vpop.f32.mrf.mxu0 }
  0x91   :  { %v110_v22 = vadd.f32 %v109_v21, %v83_v20 }
  0x93   :  { %v113_v23 = vmax.f32 %v110_v22, 0.0 }
  0x95   :  { %v114_v24 = vpack.c.bf16 %v113_v23, %v113_v23 }
  0x97   :  { %172 = vmatmul.bf16.vlgmr.msra.gmra.mxu1 %v114_v24 }
  0x98   :  { %v111_v25 = vpop.f32.mrf.mxu0 }
 0x114   :  { %v173_v29 = vpop.f32.mrf.mxu1 }
 0x115   :  { %v174_v30 = vadd.f32 %v173_v29, %v115_v28 }
 0x117   :  { %v177_v31 = vmax.f32 %v174_v30, 0.0 }
 0x119   :  { %v178_v32 = vpack.c.bf16 %v177_v31, %v177_v31 }
 0x11b   :  { %236 = vmatmul.bf16.vlgmr.msra.gmra.mxu2 %v178_v32 }
 0x11c   :  { %v175_v33 = vpop.f32.mrf.mxu1 }
 0x19e   :  { %v237_v35 = vpop.f32.mrf.mxu2 }
 0x19f   :  { %v238_v36 = vadd.f32 %v237_v35, %v179_v34 }
 0x1a1   :  { %v241_v37 = vpack.c.bf16 %v238_v36, %v238_v36 }
 0x1a3   :  { %242 = vst [vmem:[#allocation7] sm:$0xf] %v241_v37 }
 0x1a4   :  { %253 = dma.vmem_to_hbm [thread:$0]  %s249_s1, 64, %s251_s23, [#allocation4]  }
 0x1a6   :  { %v239_v38 = vpop.f32.mrf.mxu2 }
 0x1a7   :  { %433 = dma.done.wait [#allocation4], 64  }
 0x1a8   :  { %434 = vsyncadd [#allocation4], 4294967232 }
 0x1a9   :  { %258 = vsyncpa [#allocation3], 1 }
 0x1aa   :  { %259 = vsyncpa [#allocation6], 1 }
 0x1ab   :  { %260 = vsyncpa [#allocation4], 1 }

</bundles_post_ra>
